<compile_context>
chip_gen: v5e
topology: v5e:2x2
jax: 0.10.0
libtpu: 0.0.40
codegen_flags: <defaults>
</compile_context>

<pallas_src>
import math

import jax
import jax.numpy as jnp
from jax.experimental import pallas as pl
from jax.experimental.pallas import tpu as pltpu


_VMEM_LIMIT = 48 * 1024 * 1024   # explicit scoped-VMEM cap; safe headroom on v7x (64 MiB/TC)
_TM_MAX = 256                    # M tile (256-512 keeps the MXU fed; 256 also exercises gm>1)
_TN_MAX = 256                    # output-channel tile (lane-dense, multiple of 128)
_TK_MAX = 512                    # reduction tile


def _round_up(x, m):
    return ((x + m - 1) // m) * m


def _fit2(x, rows, cols):
    """Pad (with zeros) and/or slice a 2-D array to exactly (rows, cols)."""
    r, c = x.shape
    if r == rows and c == cols:
        return x
    if r > rows or c > cols:
        x = x[:min(r, rows), :min(c, cols)]
        r, c = x.shape
    return jnp.pad(x, ((0, rows - r), (0, cols - c)))


# ----------------------------------------------------------------------------
# Kernel 1: tiled bf16 matmul + fused conv-bias + fused BN batch statistics
# ----------------------------------------------------------------------------
def _make_mm_stats_kernel(tm, m_real):
    def kernel(a_ref, b_ref, bias_ref, y_ref, sum_ref, ssq_ref, acc_ref):
        i = pl.program_id(1)   # M-tile index (grid = (n, m, k); k innermost)
        k = pl.program_id(2)   # K-tile index (reduction)

        @pl.when(k == 0)
        def _():
            acc_ref[...] = jnp.zeros_like(acc_ref)

        acc_ref[...] += jnp.dot(a_ref[...], b_ref[...],
                                preferred_element_type=jnp.float32)

        @pl.when(k == pl.num_programs(2) - 1)
        def _():
            y = acc_ref[...] + bias_ref[...]          # fused conv bias
            y_ref[...] = y
            # Masked per-channel partial sums for training-mode BN statistics
            # (exclude rows that are pure tile padding).
            rows = jax.lax.broadcasted_iota(jnp.int32, (tm, 1), 0) + i * tm
            ym = jnp.where(rows < m_real, y, 0.0)
            s = jnp.sum(ym, axis=0, keepdims=True)
            ss = jnp.sum(ym * ym, axis=0, keepdims=True)

            @pl.when(i == 0)
            def _():
                sum_ref[...] = s
                ssq_ref[...] = ss

            @pl.when(i > 0)
            def _():
                sum_ref[...] = sum_ref[...] + s
                ssq_ref[...] = ssq_ref[...] + ss

    return kernel


# ----------------------------------------------------------------------------
# Kernel 2: BN normalize (+ReLU) (+fused residual add), tiled & lane-dense
# ----------------------------------------------------------------------------
def _make_norm_kernel(m_real, eps, relu, has_res):
    inv_m = 1.0 / float(m_real)

    def kernel(*refs):
        if has_res:
            y_ref, sum_ref, ssq_ref, g_ref, b_ref, res_ref, o_ref = refs
        else:
            y_ref, sum_ref, ssq_ref, g_ref, b_ref, o_ref = refs
        mean = sum_ref[...] * inv_m
        var = jnp.maximum(ssq_ref[...] * inv_m - mean * mean, 0.0)  # biased var (train-mode BN)
        scale = g_ref[...] * jax.lax.rsqrt(var + eps)
        shift = b_ref[...] - mean * scale
        out = y_ref[...] * scale + shift
        if relu:
            out = jnp.maximum(out, 0.0)
        if has_res:
            out = out + res_ref[...]
        o_ref[...] = out.astype(o_ref.dtype)

    return kernel


# ----------------------------------------------------------------------------
# Conv (as im2col matmul) + BatchNorm (+ReLU) (+residual), fully in Pallas
# ----------------------------------------------------------------------------
def conv_bn_act(patches, w_mat, bias, gamma, beta, *, m_real, relu,
                residual=None, out_dtype=jnp.float32, eps=1e-5):
    """patches: (rows >= m_real, Kin) im2col matrix (rows beyond m_real may be padding).
       w_mat:   (K_real, Cout) weight matrix with K-order (kh, kw, cin) matching patches.
       Returns (padded (Mp, Np) result of [ReLU](BN(patches@w + bias)) [+ residual], (Mp, Np))."""
    Min, Kin = patches.shape
    Cout = w_mat.shape[1]

    tm = min(_TM_MAX, _round_up(max(m_real, 16), 16))
    tn = min(_TN_MAX, _round_up(Cout, 128))
    tk = min(_TK_MAX, _round_up(Kin, 128))
    Mp = _round_up(max(Min, tm), tm)
    Np = _round_up(Cout, tn)
    Kp = _round_up(Kin, tk)
    gm, gn, gk = Mp // tm, Np // tn, Kp // tk

    a = _fit2(patches.astype(jnp.bfloat16), Mp, Kp)     # bf16 MXU operands
    b = _fit2(w_mat.astype(jnp.bfloat16), Kp, Np)
    bias_p = _fit2(bias.astype(jnp.float32).reshape(1, -1), 1, Np)
    gamma_p = _fit2(gamma.astype(jnp.float32).reshape(1, -1), 1, Np)
    beta_p = _fit2(beta.astype(jnp.float32).reshape(1, -1), 1, Np)

    # --- kernel 1: matmul + bias + BN stats in a single pass over the conv output ---
    y, s, ss = pl.pallas_call(
        _make_mm_stats_kernel(tm, m_real),
        out_shape=(jax.ShapeDtypeStruct((Mp, Np), jnp.float32),
                   jax.ShapeDtypeStruct((1, Np), jnp.float32),
                   jax.ShapeDtypeStruct((1, Np), jnp.float32)),
        grid_spec=pltpu.PrefetchScalarGridSpec(
            num_scalar_prefetch=0,
            grid=(gn, gm, gk),                                   # N-tiles outer, M-tiles, K innermost
            in_specs=[
                pl.BlockSpec((tm, tk), lambda j, i, k: (i, k)),
                pl.BlockSpec((tk, tn), lambda j, i, k: (k, j)),
                pl.BlockSpec((1, tn), lambda j, i, k: (0, j)),   # bias stays resident per j
            ],
            out_specs=(
                pl.BlockSpec((tm, tn), lambda j, i, k: (i, j)),
                pl.BlockSpec((1, tn), lambda j, i, k: (0, j)),   # stats accumulate across i, k
                pl.BlockSpec((1, tn), lambda j, i, k: (0, j)),
            ),
            scratch_shapes=[pltpu.VMEM((tm, tn), jnp.float32)]),
        compiler_params=pltpu.CompilerParams(
            # the stats outputs accumulate across the M axis -> M must be "arbitrary";
            # the channel axis stays "parallel" (megacore sharding on v7x).
            dimension_semantics=("parallel", "arbitrary", "arbitrary"),
            vmem_limit_bytes=_VMEM_LIMIT),
    )(a, b, bias_p)

    # --- kernel 2: BN affine + optional ReLU + optional fused residual add ---
    norm_ins = [y, s, ss, gamma_p, beta_p]
    norm_specs = [
        pl.BlockSpec((tm, tn), lambda i, j: (i, j)),
        pl.BlockSpec((1, tn), lambda i, j: (0, j)),
        pl.BlockSpec((1, tn), lambda i, j: (0, j)),
        pl.BlockSpec((1, tn), lambda i, j: (0, j)),
        pl.BlockSpec((1, tn), lambda i, j: (0, j)),
    ]
    if residual is not None:
        norm_ins.append(_fit2(residual.astype(jnp.float32), Mp, Np))
        norm_specs.append(pl.BlockSpec((tm, tn), lambda i, j: (i, j)))

    out = pl.pallas_call(
        _make_norm_kernel(m_real, eps, relu, residual is not None),
        out_shape=jax.ShapeDtypeStruct((Mp, Np), out_dtype),
        grid=(gm, gn),
        in_specs=norm_specs,
        out_specs=pl.BlockSpec((tm, tn), lambda i, j: (i, j)),
        compiler_params=pltpu.CompilerParams(
            dimension_semantics=("parallel", "parallel"),
            vmem_limit_bytes=_VMEM_LIMIT),
    )(*norm_ins)
    return out, (Mp, Np)


# ----------------------------------------------------------------------------
# im2col patch extraction (plain-JAX glue, channels-last, bf16)
# ----------------------------------------------------------------------------
def _extract_patches_nhwc(x, kh, kw, stride, padding, dilation):
    N, H, W, C = x.shape
    Ho = (H + 2 * padding - dilation * (kh - 1) - 1) // stride + 1
    Wo = (W + 2 * padding - dilation * (kw - 1) - 1) // stride + 1
    xp = jnp.pad(x, ((0, 0), (padding, padding), (padding, padding), (0, 0)))
    cols = []
    for i in range(kh):
        for j in range(kw):
            hi, wj = i * dilation, j * dilation
            sl = jax.lax.slice(
                xp, (0, hi, wj, 0),
                (N, hi + stride * (Ho - 1) + 1, wj + stride * (Wo - 1) + 1, C),
                (1, stride, stride, 1))
            cols.append(sl)                       # (N, Ho, Wo, C)
    pat = jnp.concatenate(cols, axis=-1)          # K-order = (kh, kw, C)
    return pat.reshape(N * Ho * Wo, kh * kw * C), (N, Ho, Wo)


# ----------------------------------------------------------------------------
# Module forward logic (BlockAtrous / BasicBlockAtrous)
# ----------------------------------------------------------------------------
def _conv_geometry(p):
    k, stride, atrous, normal = p['k'], p['stride'], p['atrous'], p['normal']
    if k == 1:
        return k, stride, 0, 1
    if normal:
        return k, stride, k // 2, 1
    return k, stride, atrous, atrous


def block_atrous_forward(p, x_nhwc, *, relu, residual=None, out_dtype=jnp.float32):
    """BlockAtrous forward: conv -> BN(train-mode stats) -> [ReLU] [+ fused residual]."""
    k, stride, padding, dilation = _conv_geometry(p)
    xb = x_nhwc.astype(jnp.bfloat16)
    if k == 1 and padding == 0 and dilation == 1:
        xs = xb[:, ::stride, ::stride, :]         # 1x1 conv: strided view is the patch matrix
        N, Ho, Wo, Cin = xs.shape
        patches = xs.reshape(N * Ho * Wo, Cin)
    else:
        patches, (N, Ho, Wo) = _extract_patches_nhwc(xb, k, k, stride, padding, dilation)
    m_real = N * Ho * Wo
    out, dims = conv_bn_act(patches, p['w_mat'], p['b'], p['gamma'], p['beta'],
                            m_real=m_real, relu=relu, residual=residual,
                            out_dtype=out_dtype)
    return out, (N, Ho, Wo, p['cout']), dims


def basic_block_atrous_forward(params, x_nchw):
    x = jnp.transpose(x_nchw, (0, 2, 3, 1)).astype(jnp.float32)   # NHWC (once, at boundary)
    N, H, W, Cin = x.shape

    # conv1: 3x3 dilated conv + BN + ReLU (emitted in bf16 -> feeds conv2's matmul directly)
    out1, (N1, H1, W1, C1), _ = block_atrous_forward(
        params['conv1'], x, relu=True, out_dtype=jnp.bfloat16)
    m1 = N1 * H1 * W1

    # identity path
    if params['downsample'] is not None:
        identity, _, _ = block_atrous_forward(
            params['downsample'], x, relu=False, out_dtype=jnp.float32)
    else:
        # PyTorch requires matching shapes here (stride == 1 and in_plane == plane).
        identity = x.reshape(N * H * W, Cin)

    # conv2: 1x1 conv + BN + ReLU, with the residual add fused into the normalize kernel
    cp = params['conv2']
    out2, _ = conv_bn_act(out1, cp['w_mat'], cp['b'], cp['gamma'], cp['beta'],
                          m_real=m1, relu=True, residual=identity,
                          out_dtype=jnp.float32)
    C2 = cp['cout']
    out = out2[:m1, :C2].reshape(N1, H1, W1, C2)
    return jnp.transpose(out, (0, 3, 1, 2))       # back to NCHW at the boundary


# ----------------------------------------------------------------------------
# Deterministic parameter construction
# ----------------------------------------------------------------------------
def init_block_atrous(key, cin, cout, k, *, stride=1, atrous=1, normal=False):
    kw_, kb, kg, kbt = jax.random.split(key, 4)
    fan_in = cin * k * k
    w = jax.random.normal(kw_, (cout, cin, k, k), jnp.float32) / math.sqrt(fan_in)
    b = 0.01 * jax.random.normal(kb, (cout,), jnp.float32)
    gamma = 1.0 + 0.1 * jax.random.normal(kg, (cout,), jnp.float32)
    beta = 0.1 * jax.random.normal(kbt, (cout,), jnp.float32)
    # (cout, cin, kh, kw) -> (kh*kw*cin, cout) to match the patch K-ordering.
    w_mat = jnp.transpose(w, (2, 3, 1, 0)).reshape(k * k * cin, cout)
    return {'w_t': w, 'w_mat': w_mat, 'b': b, 'gamma': gamma, 'beta': beta,
            'k': k, 'stride': stride, 'atrous': atrous, 'normal': normal, 'cout': cout}


def init_basic_block(key, in_plane, plane, *, atrous=1, stride=1, downsample=False):
    k1, k2, k3 = jax.random.split(key, 3)
    return {
        'conv1': init_block_atrous(k1, in_plane, plane, 3, stride=stride, atrous=atrous),
        'conv2': init_block_atrous(k2, plane, plane, 1),   # BlockAtrous(plane, plane, True) -> 1x1
        'downsample': (init_block_atrous(k3, in_plane, plane, 1, stride=stride)
                       if downsample else None),
    }


# ----------------------------------------------------------------------------
# Pure-JAX reference (XLA) for correctness checking
# ----------------------------------------------------------------------------
def _conv_bn_ref(p, x, relu, eps=1e-5):
    k, stride, padding, dilation = _conv_geometry(p)
    y = jax.lax.conv_general_dilated(
        x, p['w_t'], window_strides=(stride, stride),
        padding=[(padding, padding), (padding, padding)],
        rhs_dilation=(dilation, dilation),
        dimension_numbers=('NCHW', 'OIHW', 'NCHW'))
    y = y + p['b'].reshape(1, -1, 1, 1)
    mean = jnp.mean(y, axis=(0, 2, 3), keepdims=True)
    var = jnp.mean(jnp.square(y - mean), axis=(0, 2, 3), keepdims=True)
    y = (y - mean) * jax.lax.rsqrt(var + eps) * p['gamma'].reshape(1, -1, 1, 1) \
        + p['beta'].reshape(1, -1, 1, 1)
    if relu:
        y = jnp.maximum(y, 0.0)
    return y


def basic_block_ref(params, x):
    out = _conv_bn_ref(params['conv1'], x, True)
    out = _conv_bn_ref(params['conv2'], out, True)
    identity = (x if params['downsample'] is None
                else _conv_bn_ref(params['downsample'], x, False))
    return out + identity


# ----------------------------------------------------------------------------
if __name__ == "__main__":
    root = jax.random.PRNGKey(0)
    kp, kx = jax.random.split(root)
    x = jax.random.normal(kx, (2, 16, 16, 16), jnp.float32)   # NCHW

    # Case 1: identity residual (stride=1, in_plane == plane, dilated 3x3, atrous=2).
    p1 = init_basic_block(jax.random.fold_in(kp, 1), 16, 16, atrous=2, stride=1,
                          downsample=False)
    out1 = jax.block_until_ready(basic_block_atrous_forward(p1, x))
    ref1 = basic_block_ref(p1, x)
    assert out1.shape == (2, 16, 16, 16), out1.shape
    assert bool(jnp.all(jnp.isfinite(out1)))
    err1 = float(jnp.max(jnp.abs(out1 - ref1)))
    assert err1 < 2e-1, err1   # bf16 MXU operands vs f32 reference

    # Case 2: strided block with a 1x1-conv+BN downsample on the identity path.
    p2 = init_basic_block(jax.random.fold_in(kp, 2), 16, 32, atrous=1, stride=2,
                          downsample=True)
    out2 = jax.block_until_ready(basic_block_atrous_forward(p2, x))
    ref2 = basic_block_ref(p2, x)
    assert out2.shape == (2, 32, 8, 8), out2.shape
    assert bool(jnp.all(jnp.isfinite(out2)))
    err2 = float(jnp.max(jnp.abs(out2 - ref2)))
    assert err2 < 2e-1, err2

    print("KERNEL_OK")
</pallas_src>

<mosaic_0001>
module attributes {stable_mosaic.version = 11 : i64} {
  func.func @kernel(%arg0: i32, %arg1: i32, %arg2: i32, %arg3: memref<256x256xbf16, #tpu.memory_space<vmem>>, %arg4: memref<256x128xbf16, #tpu.memory_space<vmem>>, %arg5: memref<1x128xf32, #tpu.memory_space<vmem>>, %arg6: memref<256x128xf32, #tpu.memory_space<vmem>>, %arg7: memref<1x128xf32, #tpu.memory_space<vmem>>, %arg8: memref<1x128xf32, #tpu.memory_space<vmem>>, %arg9: memref<256x128xf32, #tpu.memory_space<vmem>>) attributes {dimension_semantics = [#tpu.dimension_semantics<parallel>, #tpu.dimension_semantics<arbitrary>, #tpu.dimension_semantics<arbitrary>], iteration_bounds = array<i64: 1, 2, 1>, scalar_prefetch = 0 : i64, scratch_operands = 1 : i64, tpu.core_type = #tpu.core_type<tc>, window_params = [{transform_indices = @transform_0, window_bounds = array<i64: 256, 256>}, {transform_indices = @transform_1, window_bounds = array<i64: 256, 128>}, {transform_indices = @transform_2, window_bounds = array<i64: 1, 128>}, {transform_indices = @transform_3, window_bounds = array<i64: 256, 128>}, {transform_indices = @transform_4, window_bounds = array<i64: 1, 128>}, {transform_indices = @transform_5, window_bounds = array<i64: 1, 128>}]} {
    %c0_i32 = arith.constant 0 : i32
    %0 = arith.cmpi eq, %arg2, %c0_i32 : i32
    %1 = arith.extui %0 : i1 to i32
    %c0_i32_0 = arith.constant 0 : i32
    %2 = arith.cmpi ne, %1, %c0_i32_0 : i32
    scf.if %2 {
      %cst_10 = arith.constant 0.000000e+00 : f32
      %12 = vector.broadcast %cst_10 : f32 to vector<256x128xf32>
      %c0_11 = arith.constant 0 : index
      %c0_12 = arith.constant 0 : index
      %13 = vector.load %arg9[%c0_11, %c0_12] : memref<256x128xf32, #tpu.memory_space<vmem>>, vector<256x128xf32>
      tpu.vector_store %arg9[%c0_11, %c0_12], %12 {strides = array<i32>} : memref<256x128xf32, #tpu.memory_space<vmem>>, vector<256x128xf32>,
    } else {
    }
    %c0 = arith.constant 0 : index
    %c0_1 = arith.constant 0 : index
    %3 = vector.load %arg9[%c0, %c0_1] : memref<256x128xf32, #tpu.memory_space<vmem>>, vector<256x128xf32>
    %c0_2 = arith.constant 0 : index
    %c0_3 = arith.constant 0 : index
    %4 = vector.load %arg3[%c0_2, %c0_3] : memref<256x256xbf16, #tpu.memory_space<vmem>>, vector<256x256xbf16>
    %c0_4 = arith.constant 0 : index
    %c0_5 = arith.constant 0 : index
    %5 = vector.load %arg4[%c0_4, %c0_5] : memref<256x128xbf16, #tpu.memory_space<vmem>>, vector<256x128xbf16>
    %cst = arith.constant dense<0.000000e+00> : vector<256x128xf32>
    %6 = tpu.matmul %4, %5, %cst {dimension_numbers = #tpu.dot_dimension_numbers<[1], [0], [0], [1], [0, 0, 1, 1], [], []>} : vector<256x256xbf16>, vector<256x128xbf16>, vector<256x128xf32> -> vector<256x128xf32>
    %7 = arith.addf %3, %6 : vector<256x128xf32>
    %c0_6 = arith.constant 0 : index
    %c0_7 = arith.constant 0 : index
    %8 = vector.load %arg9[%c0_6, %c0_7] : memref<256x128xf32, #tpu.memory_space<vmem>>, vector<256x128xf32>
    tpu.vector_store %arg9[%c0_6, %c0_7], %7 {strides = array<i32>} : memref<256x128xf32, #tpu.memory_space<vmem>>, vector<256x128xf32>,
    %c0_i32_8 = arith.constant 0 : i32
    %9 = arith.cmpi eq, %arg2, %c0_i32_8 : i32
    %10 = arith.extui %9 : i1 to i32
    %c0_i32_9 = arith.constant 0 : i32
    %11 = arith.cmpi ne, %10, %c0_i32_9 : i32
    scf.if %11 {
      %c0_10 = arith.constant 0 : index
      %c0_11 = arith.constant 0 : index
      %12 = vector.load %arg9[%c0_10, %c0_11] : memref<256x128xf32, #tpu.memory_space<vmem>>, vector<256x128xf32>
      %c0_12 = arith.constant 0 : index
      %c0_13 = arith.constant 0 : index
      %13 = vector.load %arg5[%c0_12, %c0_13] : memref<1x128xf32, #tpu.memory_space<vmem>>, vector<1x128xf32>
      %14 = vector.broadcast %13 : vector<1x128xf32> to vector<256x128xf32>
      %15 = arith.addf %12, %14 : vector<256x128xf32>
      %c0_14 = arith.constant 0 : index
      %c0_15 = arith.constant 0 : index
      %16 = vector.load %arg6[%c0_14, %c0_15] : memref<256x128xf32, #tpu.memory_space<vmem>>, vector<256x128xf32>
      tpu.vector_store %arg6[%c0_14, %c0_15], %15 {strides = array<i32>} : memref<256x128xf32, #tpu.memory_space<vmem>>, vector<256x128xf32>,
      %17 = tpu.iota {dimensions = array<i32: 0>} : vector<256x1xi32>
      %c256_i32 = arith.constant 256 : i32
      %18 = arith.muli %arg1, %c256_i32 : i32
      %19 = vector.broadcast %18 : i32 to vector<256x1xi32>
      %20 = arith.addi %17, %19 : vector<256x1xi32>
      %c512_i32 = arith.constant 512 : i32
      %21 = vector.broadcast %c512_i32 : i32 to vector<256x1xi32>
      %22 = arith.cmpi slt, %20, %21 : vector<256x1xi32>
      %cst_16 = arith.constant 0.000000e+00 : f32
      %23 = vector.shape_cast %22 : vector<256x1xi1> to vector<256x1xi1>
      %24 = vector.broadcast %23 : vector<256x1xi1> to vector<256x128xi1>
      %25 = vector.broadcast %cst_16 : f32 to vector<256x128xf32>
      %26 = arith.select %24, %15, %25 : vector<256x128xi1>, vector<256x128xf32>
      %cst_17 = arith.constant dense<0.000000e+00> : vector<128xf32>
      %27 = vector.multi_reduction <add>, %26, %cst_17 [0] : vector<256x128xf32> to vector<128xf32>
      %28 = vector.shape_cast %27 : vector<128xf32> to vector<1x128xf32>
      %29 = arith.mulf %26, %26 : vector<256x128xf32>
      %cst_18 = arith.constant dense<0.000000e+00> : vector<128xf32>
      %30 = vector.multi_reduction <add>, %29, %cst_18 [0] : vector<256x128xf32> to vector<128xf32>
      %31 = vector.shape_cast %30 : vector<128xf32> to vector<1x128xf32>
      %c0_i32_19 = arith.constant 0 : i32
      %32 = arith.cmpi eq, %arg1, %c0_i32_19 : i32
      %33 = arith.extui %32 : i1 to i32
      %c0_i32_20 = arith.constant 0 : i32
      %34 = arith.cmpi ne, %33, %c0_i32_20 : i32
      scf.if %34 {
        %c0_23 = arith.constant 0 : index
        %c0_24 = arith.constant 0 : index
        %38 = vector.load %arg7[%c0_23, %c0_24] : memref<1x128xf32, #tpu.memory_space<vmem>>, vector<1x128xf32>
        tpu.vector_store %arg7[%c0_23, %c0_24], %28 {strides = array<i32>} : memref<1x128xf32, #tpu.memory_space<vmem>>, vector<1x128xf32>,
        %c0_25 = arith.constant 0 : index
        %c0_26 = arith.constant 0 : index
        %39 = vector.load %arg8[%c0_25, %c0_26] : memref<1x128xf32, #tpu.memory_space<vmem>>, vector<1x128xf32>
        tpu.vector_store %arg8[%c0_25, %c0_26], %31 {strides = array<i32>} : memref<1x128xf32, #tpu.memory_space<vmem>>, vector<1x128xf32>,
      } else {
      }
      %c0_i32_21 = arith.constant 0 : i32
      %35 = arith.cmpi sgt, %arg1, %c0_i32_21 : i32
      %36 = arith.extui %35 : i1 to i32
      %c0_i32_22 = arith.constant 0 : i32
      %37 = arith.cmpi ne, %36, %c0_i32_22 : i32
      scf.if %37 {
        %c0_23 = arith.constant 0 : index
        %c0_24 = arith.constant 0 : index
        %38 = vector.load %arg7[%c0_23, %c0_24] : memref<1x128xf32, #tpu.memory_space<vmem>>, vector<1x128xf32>
        %39 = arith.addf %38, %28 : vector<1x128xf32>
        %c0_25 = arith.constant 0 : index
        %c0_26 = arith.constant 0 : index
        %40 = vector.load %arg7[%c0_25, %c0_26] : memref<1x128xf32, #tpu.memory_space<vmem>>, vector<1x128xf32>
        tpu.vector_store %arg7[%c0_25, %c0_26], %39 {strides = array<i32>} : memref<1x128xf32, #tpu.memory_space<vmem>>, vector<1x128xf32>,
        %c0_27 = arith.constant 0 : index
        %c0_28 = arith.constant 0 : index
        %41 = vector.load %arg8[%c0_27, %c0_28] : memref<1x128xf32, #tpu.memory_space<vmem>>, vector<1x128xf32>
        %42 = arith.addf %41, %31 : vector<1x128xf32>
        %c0_29 = arith.constant 0 : index
        %c0_30 = arith.constant 0 : index
        %43 = vector.load %arg8[%c0_29, %c0_30] : memref<1x128xf32, #tpu.memory_space<vmem>>, vector<1x128xf32>
        tpu.vector_store %arg8[%c0_29, %c0_30], %42 {strides = array<i32>} : memref<1x128xf32, #tpu.memory_space<vmem>>, vector<1x128xf32>,
      } else {
      }
    } else {
    }
    return
  }
  func.func @transform_0(%arg0: i32, %arg1: i32, %arg2: i32) -> (i32, i32) {
    %c0_i32 = arith.constant 0 : i32
    return %arg1, %arg2 : i32, i32
  }
  func.func @transform_1(%arg0: i32, %arg1: i32, %arg2: i32) -> (i32, i32) {
    %c0_i32 = arith.constant 0 : i32
    return %arg2, %arg0 : i32, i32
  }
  func.func @transform_2(%arg0: i32, %arg1: i32, %arg2: i32) -> (i32, i32) {
    %c0_i32 = arith.constant 0 : i32
    %c0_i32_0 = arith.constant 0 : i32
    return %c0_i32, %arg0 : i32, i32
  }
  func.func @transform_3(%arg0: i32, %arg1: i32, %arg2: i32) -> (i32, i32) {
    %c0_i32 = arith.constant 0 : i32
    return %arg1, %arg0 : i32, i32
  }
  func.func @transform_4(%arg0: i32, %arg1: i32, %arg2: i32) -> (i32, i32) {
    %c0_i32 = arith.constant 0 : i32
    %c0_i32_0 = arith.constant 0 : i32
    return %c0_i32, %arg0 : i32, i32
  }
  func.func @transform_5(%arg0: i32, %arg1: i32, %arg2: i32) -> (i32, i32) {
    %c0_i32 = arith.constant 0 : i32
    %c0_i32_0 = arith.constant 0 : i32
    return %c0_i32, %arg0 : i32, i32
  }
}

</mosaic_0001>

<bundles_post_ra>
// kernel: tpu_custom_call.1
= control target key start
LH: loop header
LB: loop body
LE: loop exit
PB: predicated region body
PF: predicated region fallthrough
CT: control target
= control target key end

     0   :  { %s2669_s0 = inlined_call_operand.hbm [shape: bf16[512,256], index: 0, kind: input, shape index: {}]   ;;  %s2670_s1 = inlined_call_operand.hbm [shape: bf16[256,128], index: 1, kind: input, shape index: {}]   ;;  %s2671_s2 = inlined_call_operand.vmem [shape: f32[1,128], index: 2, kind: input, shape index: {}]   ;;  %s2672_s3 = inlined_call_operand.hbm [shape: f32[512,128], index: 3, kind: output, shape index: {0}]   ;;  %s2673_s4 = inlined_call_operand.hbm [shape: f32[1,128], index: 4, kind: output, shape index: {1}]   ;;  %s2674_s5 = inlined_call_operand.hbm [shape: f32[1,128], index: 5, kind: output, shape index: {2}]  }
   0x1   :  { %2679 = sst [smem:[#allocation19_spill]] %s2670_s1 }
   0x2   :  { %11 = vsyncpa [#allocation4], 0 }
   0x3   :  { %13 = vsyncpa [#allocation4 + $0x1], 0 }
   0x4   :  { %14 = vsyncpa [#allocation7], 0 }
   0x5   :  { %15 = vsyncpa [#allocation5], 0 }
   0x6   :  { %17 = vsyncpa [#allocation5 + $0x1], 0 }
   0x7   :  { %18 = vsyncpa [#allocation10], 0  ;;  %s2182_s18 = smov 0   ;;  %s2184_s19 = smov 0  }
   0x8   :  { %s2186_s20 = smov 0   ;;  %s2188_s21 = smov 0  }
   0x9   :  { %s2190_s22 = smov 0   ;;  %s2192_s23 = smov 0  }
   0xa LB: > { %2680 = sst [smem:[#allocation16_spill]] %s2141_s23  ;;  %s1556_s24 = sadd.s32 4294967295, %s2141_s23   ;;  %s2141_s23 = sphi %s2192_s23, %s24_s23   ;;  %s2137_s22 = sphi %s2190_s22, %s2698_s22   ;;  %s2133_s21 = sphi %s2188_s21, %s2697_s21   ;;  %s2129_s20 = sphi %s2186_s20, %s2696_s20   ;;  %s2125_s19 = sphi %s2184_s19, %s2695_s19   ;;  %s2121_s18 = sphi %s2182_s18, %s2694_s18  }
   0xb   : > { %s1557_s25 = sadd.s32 4294967294, %s2141_s23   ;;  %p65_p0 = scmp.ne.s32.totalorder %s2125_s19, %s2121_s18 }
   0xc   : > { %p2216_p1 = scmp.eq.s32.totalorder %s1556_s24, 0  ;;  %p2220_p2 = scmp.eq.s32.totalorder %s1556_s24, 1 }
   0xd   : > { %p151_p3 = scmp.eq.s32.totalorder %s1557_s25, 1  ;;  %p1558_p5 = scmp.ge.s32.totalorder %s2141_s23, 1 }
   0xe   : > { %p2226_p4 = por %p2216_p1, %p65_p0  ;;  %p210_p7 = scmp.lt.s32.totalorder %s2141_s23, 3 }
   0xf   : > { %p2231_p6 = por %p151_p3, %p65_p0  ;;  %s2686_s1 = sld [smem:[#allocation19_spill]] }
  0x10   : > { %p2239_p8 = pnand %p1558_p5, %p210_p7  ;;  %s2143_s9 = smov [#allocation6]  }
  0x11   : > { %s2684_s29 = scalar_select %p2231_p6, 1, 0 }
  0x12   : > { %p1857_p9 = pneg %p2239_p8  ;;  %s227_s10 = sshll.u32 %s2143_s9, 4  ;;  %s228_s10 = int_to_ptr.vmem [resolvable:$true] %s227_s10 }
  0x13   : > { %2685 = sst [smem:[#allocation17_spill]] %s2684_s29  ;;  %p1561_p11 = scmp.ge.s32.totalorder %s2141_s23, 2 }
  0x14   : > { %p1858_p10 = pnand %p1857_p9, %p2216_p1  ;;  %s2144_s11 = smov 64  }
  0x15   : > { %s225_s7 = sshll.u32 %s2686_s1, 4  ;;  %s2145_s12 = smov 4   ;;  %s226_s7 = int_to_ptr.hbm [resolvable:$true] %s225_s7 }
  0x16   : > { %1860 = dma.hbm_to_vmem [thread:$0]  (!%p1858_p10), %s226_s7, 2048, %s228_s10, [#allocation7], %s2144_s11, %s2144_s11, %s2145_s12  }
  0x17   : > { %s39_s13 = sadd.s32 1, %s2137_s22  ;;  %s52_s14 = sadd.s32 1, %s2129_s20 }
  0x18   : > { %p41_p12 = scmp.ge.s32.totalorder %s39_s13, 2  ;;  %p59_p13 = scmp.ne.s32.totalorder %s2129_s20, %s2125_s19 }
  0x19   : > { %p60_p0 = scmp.eq.s32.totalorder %s2141_s23, 0  ;;  %p1870_p7 = scmp.lt.s32.totalorder %s2141_s23, 2 }
  0x1a   : > { %s2700_s13 = smov (%p41_p12, %s39_s13), 0  ;;  %p2261_p5 = por %p2220_p2, %p59_p13 }
  0x1b   : > { %2688 = sst [smem:[#allocation18_spill]] %s2700_s13  ;;  %p2255_p3 = por %p60_p0, %p59_p13 }
  0x1c   : > { %s47_s17 = ssub.s32 %s2137_s22, %s2700_s13  ;;  %s247_s24 = sand.u32 1, %s2129_s20  }
  0x1d   : > { %p50_p9 = scmp.eq.s32.totalorder %s47_s17, 0  ;;  %s1562_s25 = sshll.u32 %s247_s24, 8 }
  0x1e   : > { %s1775_s6 = sshll.u32 %s2137_s22, 8  ;;  %s251_s11 = scalar_lea.vmem [#allocation3], %s1562_s25 }
  0x1f   : > { %s2270_s30 = scalar_select %p50_p9, %s2129_s20, %s52_s14  }
  0x20   : > { %s259_s10 = scalar_lea.hbm %s2669_s0, %s1775_s6  ;;  %s262_s12 = sshll.u32 %s251_s11, 4  ;;  %s263_s12 = int_to_ptr.vmem [resolvable:$true] %s262_s12 }
  0x21   : > { %s260_s1 = sshll.u32 %s259_s10, 4  ;;  %p1862_p10 = pnand %p1870_p7, %p2255_p3  ;;  %s261_s1 = int_to_ptr.hbm [resolvable:$true] %s260_s1 }
  0x22   : > { %s248_s29 = scalar_lea.sflag [#allocation4], %s247_s24  ;;  %s2146_s13 = smov 128  }
  0x23   : > { %s2147_s23 = smov 8   ;;  %274 = sbr.rel (%p2239_p8) target bundleno = 410 (0x19a), region = 32 }
  0x24   : > { %1864 = dma.hbm_to_vmem [thread:$0]  (!%p1862_p10), %s261_s1, 4096, %s263_s12, %s248_s29, %s2146_s13, %s2146_s13, %s2147_s23  }
  0x25   : > { %s2281_s14 = sand.u32 (!%p2239_p8), 1, %s2125_s19  }
  0x26   : > { %s1567_s17 = sshll.u32 (!%p2239_p8), %s2281_s14, 8  ;;  %s277_s25 = scalar_lea.sflag (!%p2239_p8), [#allocation4], %s2281_s14 }
  0x27   : > { %s2287_s6 = scalar_lea.vmem (!%p2239_p8), [#allocation3], %s1567_s17 }
  0x28   : > { %2104 = dma.done.wait (%p2226_p4), %s277_s25, 4096  }
  0x29   : > { %2106 = vsyncadd (%p2226_p4), %s277_s25, 4294963200 }
  0x2a   : > { %2108 = dma.done.wait (%p2216_p1), [#allocation7], 2048  }
  0x2b   : > { %2110 = vsyncadd (%p2216_p1), [#allocation7], 4294965248  ;;  %v1815_v0 = vld [vmem:[#allocation6 + $0x38] sm:$0xff]  ;;  %v1814_v2 = vld [vmem:[#allocation6 + $0x30] sm:$0xff]  ;;  %s1762_s1 = sshll.u32 %s2133_s21, 8  ;;  %s2379_s28 = scalar_lea.vmem [#allocation8], %s1567_s17 }
  0x2c   : > { %v1823_v1 = vld [vmem:[#allocation6 + $0x78] sm:$0xff]  ;;  %711 = vmatpush.bf16.msra.mxu0 %v1815_v0  ;;  %v1822_v3 = vld [vmem:[#allocation6 + $0x70] sm:$0xff]  ;;  %1825 = vmatpush.bf16.msra.mxu2 %v1815_v0  ;;  %v1813_v4 = vld [vmem:[#allocation6 + $0x28] sm:$0xff]  ;;  %p1763_p1 = scmp.ne.s32.totalorder %s2133_s21, 0 }
  0x2d   : > { %800 = vmatpush.bf16.msra.mxu1 %v1823_v1  ;;  %1833 = vmatpush.bf16.msra.mxu3 %v1823_v1  ;;  %v1821_v5 = vld [vmem:[#allocation6 + $0x68] sm:$0xff]  ;;  %v1812_v6 = vld [vmem:[#allocation6 + $0x20] sm:$0xff]  ;;  %v1811_v8 = vld [vmem:[#allocation6 + $0x18] sm:$0xff] }
  0x2e   : > { %v1820_v7 = vld [vmem:[#allocation6 + $0x60] sm:$0xff]  ;;  %v1819_v9 = vld [vmem:[#allocation6 + $0x58] sm:$0xff]  ;;  %v1810_v10 = vld [vmem:[#allocation6 + $0x10] sm:$0xff] }
  0x2f   : > { %v1818_v11 = vld [vmem:[#allocation6 + $0x50] sm:$0xff]  ;;  %v1809_v12 = vld [vmem:[#allocation6 + $0x8] sm:$0xff]  ;;  %v1808_v14 = vld [vmem:[#allocation6] sm:$0xff] }
  0x30   : > { %712 = vmatpush.bf16.msra.mxu0 %v1814_v2  ;;  %1826 = vmatpush.bf16.msra.mxu2 %v1814_v2  ;;  %v1817_v13 = vld [vmem:[#allocation6 + $0x48] sm:$0xff]  ;;  %v1816_v15 = vld [vmem:[#allocation6 + $0x40] sm:$0xff]  ;;  %v1580_v28 = vld [vmem:[%s2287_s6 + $0x10] sm:$0xf] }
  0x31   : > { %801 = vmatpush.bf16.msra.mxu1 %v1822_v3  ;;  %1834 = vmatpush.bf16.msra.mxu3 %v1822_v3  ;;  %v1572_v16 = vld [vmem:[%s2287_s6] sm:$0xf]  ;;  %v1777_v17 = vld [vmem:[%s2287_s6 + $0x4] sm:$0xf0]  ;;  %v1776_v18 = vld [vmem:[%s2287_s6 + $0x4] sm:$0xf] }
  0x32   : > { %v1574_v19 = vld [vmem:[%s2287_s6 + $0x8] sm:$0xf0]  ;;  %v1636_v20 = vld [vmem:[%s2287_s6 + $0x80] sm:$0xf]  ;;  %v1793_v21 = vld [vmem:[%s2287_s6 + $0x84] sm:$0xf0]  ;;  %v1573_v24 = vor.u32 %v1777_v17, %v1572_v16 }
  0x33   : > { %v1792_v22 = vld [vmem:[%s2287_s6 + $0x84] sm:$0xf]  ;;  %v1638_v23 = vld [vmem:[%s2287_s6 + $0x88] sm:$0xf0]  ;;  %v1577_v25 = vor.u32 %v1776_v18, %v1574_v19  ;;  %v1637_v26 = vor.u32 %v1793_v21, %v1636_v20  ;;  %v1779_v29 = vld [vmem:[%s2287_s6 + $0x14] sm:$0xf0] }
  0x34   : > { %713 = vmatpush.bf16.msra.mxu0 %v1813_v4  ;;  %1827 = vmatpush.bf16.msra.mxu2 %v1813_v4  ;;  %v1641_v27 = vor.u32 %v1792_v22, %v1638_v23  ;;  %v1778_v30 = vld [vmem:[%s2287_s6 + $0x14] sm:$0xf]  ;;  %v1582_v31 = vld [vmem:[%s2287_s6 + $0x18] sm:$0xf0]  ;;  %v1644_v32 = vld [vmem:[%s2287_s6 + $0x90] sm:$0xf]  ;;  %v1581_v36 = vor.u32 %v1779_v29, %v1580_v28 }
  0x35   : > { %802 = vmatpush.bf16.msra.mxu1 %v1821_v5  ;;  %1835 = vmatpush.bf16.msra.mxu3 %v1821_v5  ;;  %v1795_v33 = vld [vmem:[%s2287_s6 + $0x94] sm:$0xf0]  ;;  %v1794_v34 = vld [vmem:[%s2287_s6 + $0x94] sm:$0xf]  ;;  %v1646_v35 = vld [vmem:[%s2287_s6 + $0x98] sm:$0xf0]  ;;  %v1585_v37 = vor.u32 %v1778_v30, %v1582_v31 }
  0x36   : > { %v1645_v38 = vor.u32 %v1795_v33, %v1644_v32  ;;  %v1649_v39 = vor.u32 %v1794_v34, %v1646_v35  ;;  %v1588_v40 = vld [vmem:[%s2287_s6 + $0x20] sm:$0xf]  ;;  %v1781_v41 = vld [vmem:[%s2287_s6 + $0x24] sm:$0xf0]  ;;  %v1780_v42 = vld [vmem:[%s2287_s6 + $0x24] sm:$0xf] }
  0x37   : > { %v1590_v43 = vld [vmem:[%s2287_s6 + $0x28] sm:$0xf0]  ;;  %v1652_v44 = vld [vmem:[%s2287_s6 + $0xa0] sm:$0xf]  ;;  %v1797_v45 = vld [vmem:[%s2287_s6 + $0xa4] sm:$0xf0]  ;;  %v1589_v48 = vor.u32 %v1781_v41, %v1588_v40 }
  0x38   : > { %714 = vmatpush.bf16.msra.mxu0 %v1812_v6  ;;  %1828 = vmatpush.bf16.msra.mxu2 %v1812_v6  ;;  %v1796_v46 = vld [vmem:[%s2287_s6 + $0xa4] sm:$0xf]  ;;  %v1654_v47 = vld [vmem:[%s2287_s6 + $0xa8] sm:$0xf0]  ;;  %v1593_v49 = vor.u32 %v1780_v42, %v1590_v43  ;;  %v1653_v50 = vor.u32 %v1797_v45, %v1652_v44  ;;  %v1596_v52 = vld [vmem:[%s2287_s6 + $0x30] sm:$0xf] }
  0x39   : > { %803 = vmatpush.bf16.msra.mxu1 %v1820_v7  ;;  %1836 = vmatpush.bf16.msra.mxu3 %v1820_v7  ;;  %v1657_v51 = vor.u32 %v1796_v46, %v1654_v47  ;;  %v1783_v53 = vld [vmem:[%s2287_s6 + $0x34] sm:$0xf0]  ;;  %v1782_v54 = vld [vmem:[%s2287_s6 + $0x34] sm:$0xf]  ;;  %v1598_v55 = vld [vmem:[%s2287_s6 + $0x38] sm:$0xf0] }
  0x3a   : > { %v1660_v56 = vld [vmem:[%s2287_s6 + $0xb0] sm:$0xf]  ;;  %v1799_v57 = vld [vmem:[%s2287_s6 + $0xb4] sm:$0xf0]  ;;  %v1798_v58 = vld [vmem:[%s2287_s6 + $0xb4] sm:$0xf]  ;;  %v1597_v60 = vor.u32 %v1783_v53, %v1596_v52  ;;  %v1601_v61 = vor.u32 %v1782_v54, %v1598_v55  ;;  %v2371_v54 = vstv %s1762_s1 }
  0x3b   : > { %v1662_v59 = vld [vmem:[%s2287_s6 + $0xb8] sm:$0xf0]  ;;  %v1661_v62 = vor.u32 %v1799_v57, %v1660_v56  ;;  %v1604_v0 = vld [vmem:[%s2287_s6 + $0x40] sm:$0xf]  ;;  %v1785_v1 = vld [vmem:[%s2287_s6 + $0x44] sm:$0xf0] }
  0x3c   : > { %715 = vmatpush.bf16.msra.mxu0 %v1811_v8  ;;  %1829 = vmatpush.bf16.msra.mxu2 %v1811_v8  ;;  %v1665_v63 = vor.u32 %v1798_v58, %v1662_v59  ;;  %v1784_v2 = vld [vmem:[%s2287_s6 + $0x44] sm:$0xf]  ;;  %v1606_v3 = vld [vmem:[%s2287_s6 + $0x48] sm:$0xf0]  ;;  %v1668_v4 = vld [vmem:[%s2287_s6 + $0xc0] sm:$0xf]  ;;  %v1605_v8 = vor.u32 %v1785_v1, %v1604_v0 }
  0x3d   : > { %804 = vmatpush.bf16.msra.mxu1 %v1819_v9  ;;  %1837 = vmatpush.bf16.msra.mxu3 %v1819_v9  ;;  %v1801_v5 = vld [vmem:[%s2287_s6 + $0xc4] sm:$0xf0]  ;;  %v1800_v6 = vld [vmem:[%s2287_s6 + $0xc4] sm:$0xf]  ;;  %v1670_v7 = vld [vmem:[%s2287_s6 + $0xc8] sm:$0xf0]  ;;  %v1609_v9 = vor.u32 %v1784_v2, %v1606_v3 }
  0x3e   : > { %v1676_v16 = vld [vmem:[%s2287_s6 + $0xd0] sm:$0xf]  ;;  %v1803_v17 = vld [vmem:[%s2287_s6 + $0xd4] sm:$0xf0]  ;;  %v1802_v18 = vld [vmem:[%s2287_s6 + $0xd4] sm:$0xf] }
  0x3f   : > { %v1678_v19 = vld [vmem:[%s2287_s6 + $0xd8] sm:$0xf0]  ;;  %v1677_v22 = vor.u32 %v1803_v17, %v1676_v16  ;;  %v1684_v28 = vld [vmem:[%s2287_s6 + $0xe0] sm:$0xf]  ;;  %v1805_v29 = vld [vmem:[%s2287_s6 + $0xe4] sm:$0xf0] }
  0x40   : > { %716 = vmatpush.bf16.msra.mxu0 %v1810_v10  ;;  %1830 = vmatpush.bf16.msra.mxu2 %v1810_v10  ;;  %v1669_v10 = vor.u32 %v1801_v5, %v1668_v4  ;;  %v1681_v23 = vor.u32 %v1802_v18, %v1678_v19  ;;  %v1804_v30 = vld [vmem:[%s2287_s6 + $0xe4] sm:$0xf]  ;;  %v1686_v31 = vld [vmem:[%s2287_s6 + $0xe8] sm:$0xf0]  ;;  %v1685_v34 = vor.u32 %v1805_v29, %v1684_v28  ;;  %v1692_v40 = vld [vmem:[%s2287_s6 + $0xf0] sm:$0xf] }
  0x41   : > { %805 = vmatpush.bf16.msra.mxu1 %v1818_v11  ;;  %1838 = vmatpush.bf16.msra.mxu3 %v1818_v11  ;;  %v1673_v11 = vor.u32 %v1800_v6, %v1670_v7  ;;  %v1689_v35 = vor.u32 %v1804_v30, %v1686_v31  ;;  %v1807_v41 = vld [vmem:[%s2287_s6 + $0xf4] sm:$0xf0]  ;;  %v1806_v42 = vld [vmem:[%s2287_s6 + $0xf4] sm:$0xf]  ;;  %v1694_v43 = vld [vmem:[%s2287_s6 + $0xf8] sm:$0xf0] }
  0x42   : > { %v1693_v46 = vor.u32 %v1807_v41, %v1692_v40  ;;  %v1697_v47 = vor.u32 %v1806_v42, %v1694_v43 }
  0x44   : > { %717 = vmatpush.bf16.msra.mxu0 %v1809_v12  ;;  %1831 = vmatpush.bf16.msra.mxu2 %v1809_v12  ;;  %v1612_v12 = vld [vmem:[%s2287_s6 + $0x50] sm:$0xf] }
  0x45   : > { %806 = vmatpush.bf16.msra.mxu1 %v1817_v13  ;;  %1839 = vmatpush.bf16.msra.mxu3 %v1817_v13  ;;  %v1787_v13 = vld [vmem:[%s2287_s6 + $0x54] sm:$0xf0] }
  0x46   : > { %v1613_v20 = vor.u32 %v1787_v13, %v1612_v12 }
  0x48   : > { %718 = vmatpush.bf16.msra.mxu0 %v1808_v14  ;;  %1832 = vmatpush.bf16.msra.mxu2 %v1808_v14  ;;  %v1786_v14 = vld [vmem:[%s2287_s6 + $0x54] sm:$0xf] }
  0x49   : > { %807 = vmatpush.bf16.msra.mxu1 %v1816_v15  ;;  %1840 = vmatpush.bf16.msra.mxu3 %v1816_v15  ;;  %v1614_v15 = vld [vmem:[%s2287_s6 + $0x58] sm:$0xf0] }
  0x4a   : > { %v1617_v21 = vor.u32 %v1786_v14, %v1614_v15 }
  0x4b   : > { %719 = vmatmul.bf16.vlgmr.msra.gmra.mxu0 %v1573_v24  ;;  %759 = vmatmul.bf16.vlgmr.msra.gmra.mxu2 %v1637_v26  ;;  %v1620_v24 = vld [vmem:[%s2287_s6 + $0x60] sm:$0xf]  ;;  %v1788_v26 = vld [vmem:[%s2287_s6 + $0x64] sm:$0xf] }
  0x4c   : > { %808 = vmatmul.bf16.vlgmr.msra.gmra.mxu1 %v1577_v25  ;;  %848 = vmatmul.bf16.vlgmr.msra.gmra.mxu3 %v1641_v27  ;;  %v1789_v25 = vld [vmem:[%s2287_s6 + $0x64] sm:$0xf0]  ;;  %v1622_v27 = vld [vmem:[%s2287_s6 + $0x68] sm:$0xf0] }
  0x4d   : > { %v1621_v32 = vor.u32 %v1789_v25, %v1620_v24  ;;  %v1625_v33 = vor.u32 %v1788_v26, %v1622_v27 }
  0x5b   : > { %724 = vmatmul.bf16.gmra.mxu0 %v1581_v36  ;;  %764 = vmatmul.bf16.gmra.mxu2 %v1645_v38  ;;  %v1628_v36 = vld [vmem:[%s2287_s6 + $0x70] sm:$0xf]  ;;  %v1790_v38 = vld [vmem:[%s2287_s6 + $0x74] sm:$0xf] }
  0x5c   : > { %813 = vmatmul.bf16.gmra.mxu1 %v1585_v37  ;;  %853 = vmatmul.bf16.gmra.mxu3 %v1649_v39  ;;  %v1791_v37 = vld [vmem:[%s2287_s6 + $0x74] sm:$0xf0]  ;;  %v1630_v39 = vld [vmem:[%s2287_s6 + $0x78] sm:$0xf0] }
  0x5d   : > { %v1629_v44 = vor.u32 %v1791_v37, %v1628_v36  ;;  %v1633_v45 = vor.u32 %v1790_v38, %v1630_v39 }
  0x6b   : > { %729 = vmatmul.bf16.gmra.mxu0 %v1589_v48  ;;  %769 = vmatmul.bf16.gmra.mxu2 %v1653_v50  ;;  %v1056_v48 = vlaneseq }
  0x6c   : > { %818 = vmatmul.bf16.gmra.mxu1 %v1593_v49  ;;  %858 = vmatmul.bf16.gmra.mxu3 %v1657_v51  ;;  %v2365_v49 = vld [vmem:[%s2671_s2] ss:$0 sm:$0xff] }
  0x6d   : > { %v2367_v52 = vshrl.u32 %v1056_v48, 7 }
  0x6f   : > { %v1058_v55 = vadd.s32 8, %v2367_v52  ;;  %v1091_v57 = vadd.s32 %v2371_v54, %v2367_v52  ;;  %v1059_v1 = vadd.s32 16, %v2367_v52  ;;  %v1060_v17 = vadd.s32 24, %v2367_v52 }
  0x70   : > { %v1061_v31 = vadd.s32 32, %v2367_v52 }
  0x71   : > { %v1092_v58 = vadd.s32 %v2371_v54, %v1058_v55  ;;  %vm1123_vm0 = vcmp.lt.s32.totalorder %v1091_v57, 512 }
  0x72   : > { %v1095_v37 = vadd.s32 %v2371_v54, %v1061_v31 }
  0x73   : > { %vm1124_vm1 = vcmp.lt.s32.totalorder %v1092_v58, 512 }
  0x74   : > { %vm1127_vm4 = vcmp.lt.s32.totalorder %v1095_v37, 512 }
  0x7b   : > { %734 = vmatmul.bf16.gmra.mxu0 %v1597_v60  ;;  %774 = vmatmul.bf16.gmra.mxu2 %v1661_v62 }
  0x7c   : > { %823 = vmatmul.bf16.gmra.mxu1 %v1601_v61  ;;  %863 = vmatmul.bf16.gmra.mxu3 %v1665_v63 }
  0x8b   : > { %739 = vmatmul.bf16.gmra.mxu0 %v1605_v8  ;;  %779 = vmatmul.bf16.gmra.mxu2 %v1669_v10 }
  0x8c   : > { %828 = vmatmul.bf16.gmra.mxu1 %v1609_v9  ;;  %868 = vmatmul.bf16.gmra.mxu3 %v1673_v11  ;;  %v1093_v9 = vadd.s32 %v2371_v54, %v1059_v1 }
  0x8e   : > { %vm1125_vm2 = vcmp.lt.s32.totalorder %v1093_v9, 512 }
  0x9b   : > { %744 = vmatmul.bf16.gmra.mxu0 %v1613_v20  ;;  %784 = vmatmul.bf16.gmra.mxu2 %v1677_v22 }
  0x9c   : > { %833 = vmatmul.bf16.gmra.mxu1 %v1617_v21  ;;  %873 = vmatmul.bf16.gmra.mxu3 %v1681_v23  ;;  %v1094_v23 = vadd.s32 %v2371_v54, %v1060_v17 }
  0x9e   : > { %vm1126_vm3 = vcmp.lt.s32.totalorder %v1094_v23, 512 }
  0xab   : > { %749 = vmatmul.bf16.gmra.mxu0 %v1621_v32  ;;  %789 = vmatmul.bf16.gmra.mxu2 %v1685_v34 }
  0xac   : > { %838 = vmatmul.bf16.gmra.mxu1 %v1625_v33  ;;  %878 = vmatmul.bf16.gmra.mxu3 %v1689_v35 }
  0xbb   : > { %754 = vmatmul.bf16.gmra.mxu0 %v1629_v44  ;;  %794 = vmatmul.bf16.gmra.mxu2 %v1693_v46 }
  0xbc   : > { %843 = vmatmul.bf16.gmra.mxu1 %v1633_v45  ;;  %883 = vmatmul.bf16.gmra.mxu3 %v1697_v47 }
  0xc8   : > { %v720_v50 = vpop.f32.mrf.mxu0 }
  0xc9   : > { %v809_v51 = vpop.f32.mrf.mxu1 }
  0xca   : > { %v810_v53 = vadd.f32 %v809_v51, %v720_v50 }
  0xcc   : > { %v992_v56 = vadd.f32 %v2365_v49, %v810_v53 }
  0xce   : > { %1024 = vst [vmem:[%s2379_s28] sm:$0xff] %v992_v56  ;;  %v760_v59 = vpop.f32.mrf.mxu2  ;;  %v1219_v3 = vsel %vm1123_vm0, %v992_v56, 0.0 }
  0xcf   : > { %v849_v60 = vpop.f32.mrf.mxu3  ;;  %v1288_v6 = vmul.f32 %v1219_v3, %v1219_v3 }
  0xd0   : > { %v722_v61 = vpop.f32.mrf.mxu0  ;;  %v850_v63 = vadd.f32 %v849_v60, %v760_v59 }
  0xd1   : > { %v811_v62 = vpop.f32.mrf.mxu1 }
  0xd2   : > { %v812_v0 = vadd.f32 %v811_v62, %v722_v61  ;;  %v2385_v2 = vadd.f32 %v2365_v49, %v850_v63 }
  0xd4   : > { %v993_v4 = vadd.f32 %v2365_v49, %v812_v0  ;;  %1040 = vst [vmem:[%s2379_s28 + $0x80] sm:$0xff] %v2385_v2 }
  0xd6   : > { %1025 = vst [vmem:[%s2379_s28 + $0x8] sm:$0xff] %v993_v4  ;;  %v1220_v5 = vsel %vm1124_vm1, %v993_v4, 0.0  ;;  %v762_v10 = vpop.f32.mrf.mxu2 }
  0xd7   : > { %v1251_v7 = vadd.f32 %v1220_v5, %v1219_v3  ;;  %v1289_v8 = vmul.f32 %v1220_v5, %v1220_v5  ;;  %v851_v11 = vpop.f32.mrf.mxu3 }
  0xd8   : > { %v725_v13 = vpop.f32.mrf.mxu0  ;;  %v852_v15 = vadd.f32 %v851_v11, %v762_v10 }
  0xd9   : > { %v1320_v12 = vadd.f32 %v1289_v8, %v1288_v6  ;;  %v814_v14 = vpop.f32.mrf.mxu1 }
  0xda   : > { %v815_v16 = vadd.f32 %v814_v14, %v725_v13  ;;  %v2394_v18 = vadd.f32 %v2365_v49, %v852_v15 }
  0xdc   : > { %v994_v19 = vadd.f32 %v2365_v49, %v815_v16  ;;  %1041 = vst [vmem:[%s2379_s28 + $0x88] sm:$0xff] %v2394_v18 }
  0xde   : > { %1026 = vst [vmem:[%s2379_s28 + $0x10] sm:$0xff] %v994_v19  ;;  %v1221_v20 = vsel %vm1125_vm2, %v994_v19, 0.0  ;;  %v765_v24 = vpop.f32.mrf.mxu2 }
  0xdf   : > { %v1252_v21 = vadd.f32 %v1251_v7, %v1221_v20  ;;  %v1290_v22 = vmul.f32 %v1221_v20, %v1221_v20  ;;  %v854_v25 = vpop.f32.mrf.mxu3 }
  0xe0   : > { %v727_v27 = vpop.f32.mrf.mxu0  ;;  %v855_v29 = vadd.f32 %v854_v25, %v765_v24 }
  0xe1   : > { %v1321_v26 = vadd.f32 %v1320_v12, %v1290_v22  ;;  %v816_v28 = vpop.f32.mrf.mxu1 }
  0xe2   : > { %v817_v30 = vadd.f32 %v816_v28, %v727_v27  ;;  %v2403_v32 = vadd.f32 %v2365_v49, %v855_v29 }
  0xe4   : > { %v995_v33 = vadd.f32 %v2365_v49, %v817_v30  ;;  %1042 = vst [vmem:[%s2379_s28 + $0x90] sm:$0xff] %v2403_v32 }
  0xe6   : > { %1027 = vst [vmem:[%s2379_s28 + $0x18] sm:$0xff] %v995_v33  ;;  %v1222_v34 = vsel %vm1126_vm3, %v995_v33, 0.0  ;;  %v767_v38 = vpop.f32.mrf.mxu2 }
  0xe7   : > { %v1253_v35 = vadd.f32 %v1252_v21, %v1222_v34  ;;  %v1291_v36 = vmul.f32 %v1222_v34, %v1222_v34  ;;  %v856_v39 = vpop.f32.mrf.mxu3 }
  0xe8   : > { %v730_v41 = vpop.f32.mrf.mxu0  ;;  %v857_v43 = vadd.f32 %v856_v39, %v767_v38 }
  0xe9   : > { %v1322_v40 = vadd.f32 %v1321_v26, %v1291_v36  ;;  %v819_v42 = vpop.f32.mrf.mxu1 }
  0xea   : > { %v820_v44 = vadd.f32 %v819_v42, %v730_v41  ;;  %v2411_v45 = vadd.f32 %v2365_v49, %v857_v43 }
  0xec   : > { %v996_v46 = vadd.f32 %v2365_v49, %v820_v44  ;;  %1043 = vst [vmem:[%s2379_s28 + $0x98] sm:$0xff] %v2411_v45 }
  0xee   : > { %1028 = vst [vmem:[%s2379_s28 + $0x20] sm:$0xff] %v996_v46  ;;  %v1223_v47 = vsel %vm1127_vm4, %v996_v46, 0.0  ;;  %v770_v51 = vpop.f32.mrf.mxu2 }
  0xef   : > { %v2417_v48 = vadd.f32 %v1253_v35, %v1223_v47  ;;  %v1292_v50 = vmul.f32 %v1223_v47, %v1223_v47  ;;  %v859_v53 = vpop.f32.mrf.mxu3  ;;  %v1062_v47 = vadd.s32 40, %v2367_v52 }
  0xf0   : > { %v732_v56 = vpop.f32.mrf.mxu0  ;;  %v860_v58 = vadd.f32 %v859_v53, %v770_v51  ;;  %v1063_v53 = vadd.s32 48, %v2367_v52 }
  0xf1   : > { %v2419_v55 = vadd.f32 %v1322_v40, %v1292_v50  ;;  %v821_v57 = vpop.f32.mrf.mxu1 }
  0xf2   : > { %v822_v59 = vadd.f32 %v821_v57, %v732_v56  ;;  %v2422_v60 = vadd.f32 %v2365_v49, %v860_v58  ;;  %v1096_v57 = vadd.s32 %v2371_v54, %v1062_v47  ;;  %v1064_v58 = vadd.s32 56, %v2367_v52 }
  0xf3   : > { %v1071_v47 = vadd.s32 112, %v2367_v52 }
  0xf4   : > { %v2425_v61 = vadd.f32 %v2365_v49, %v822_v59  ;;  %1044 = vst [vmem:[%s2379_s28 + $0xa0] sm:$0xff] %v2422_v60  ;;  %v1097_v59 = vadd.s32 %v2371_v54, %v1063_v53  ;;  %vm1128_vm5 = vcmp.lt.s32.totalorder %v1096_v57, 512  ;;  %v1074_v57 = vadd.s32 136, %v2367_v52 }
  0xf6   : > { %1029 = vst [vmem:[%s2379_s28 + $0x28] sm:$0xff] %v2425_v61  ;;  %v772_v62 = vpop.f32.mrf.mxu2  ;;  %vm1129_vm6 = vcmp.lt.s32.totalorder %v1097_v59, 512 }
  0xf7   : > { %v861_v63 = vpop.f32.mrf.mxu3 }
  0xf8   : > { %v735_v0 = vpop.f32.mrf.mxu0  ;;  %v862_v3 = vadd.f32 %v861_v63, %v772_v62  ;;  %v1065_v62 = vadd.s32 64, %v2367_v52 }
  0xf9   : > { %v824_v1 = vpop.f32.mrf.mxu1 }
  0xfa   : > { %v825_v4 = vadd.f32 %v824_v1, %v735_v0  ;;  %v2432_v5 = vadd.f32 %v2365_v49, %v862_v3 }
  0xfc   : > { %v2435_v6 = vadd.f32 %v2365_v49, %v825_v4  ;;  %1045 = vst [vmem:[%s2379_s28 + $0xa8] sm:$0xff] %v2432_v5 }
  0xfe   : > { %1030 = vst [vmem:[%s2379_s28 + $0x30] sm:$0xff] %v2435_v6  ;;  %v775_v7 = vpop.f32.mrf.mxu2 }
  0xff   : > { %v864_v8 = vpop.f32.mrf.mxu3 }
 0x100   : > { %v737_v9 = vpop.f32.mrf.mxu0  ;;  %v865_v11 = vadd.f32 %v864_v8, %v775_v7  ;;  %v1098_v7 = vadd.s32 %v2371_v54, %v1064_v58  ;;  %v1066_v8 = vadd.s32 72, %v2367_v52 }
 0x101   : > { %v826_v10 = vpop.f32.mrf.mxu1 }
 0x102   : > { %v827_v12 = vadd.f32 %v826_v10, %v737_v9  ;;  %v2442_v13 = vadd.f32 %v2365_v49, %v865_v11  ;;  %v1099_v11 = vadd.s32 %v2371_v54, %v1065_v62  ;;  %vm1130_vm7 = vcmp.lt.s32.totalorder %v1098_v7, 512 }
 0x104   : > { %v2445_v14 = vadd.f32 %v2365_v49, %v827_v12  ;;  %1046 = vst [vmem:[%s2379_s28 + $0xb0] sm:$0xff] %v2442_v13  ;;  %vm1131_vm8 = vcmp.lt.s32.totalorder %v1099_v11, 512 }
 0x106   : > { %1031 = vst [vmem:[%s2379_s28 + $0x38] sm:$0xff] %v2445_v14  ;;  %v777_v15 = vpop.f32.mrf.mxu2 }
 0x107   : > { %v866_v16 = vpop.f32.mrf.mxu3 }
 0x108   : > { %v740_v17 = vpop.f32.mrf.mxu0  ;;  %v867_v20 = vadd.f32 %v866_v16, %v777_v15  ;;  %v1224_v15 = vsel %vm1128_vm5, %v2425_v61, 0.0  ;;  %v1067_v16 = vadd.s32 80, %v2367_v52  ;;  %v1073_v61 = vadd.s32 128, %v2367_v52 }
 0x109   : > { %v829_v19 = vpop.f32.mrf.mxu1 }
 0x10a   : > { %v830_v21 = vadd.f32 %v829_v19, %v740_v17  ;;  %v2452_v22 = vadd.f32 %v2365_v49, %v867_v20  ;;  %v1100_v17 = vadd.s32 %v2371_v54, %v1066_v8  ;;  %v1225_v19 = vsel %vm1129_vm6, %v2435_v6, 0.0 }
 0x10b   : > { %v1068_v20 = vadd.s32 88, %v2367_v52  ;;  %v1255_v6 = vadd.f32 %v2417_v48, %v1224_v15  ;;  %v1107_v59 = vadd.s32 %v2371_v54, %v1073_v61 }
 0x10c   : > { %v2455_v23 = vadd.f32 %v2365_v49, %v830_v21  ;;  %1047 = vst [vmem:[%s2379_s28 + $0xb8] sm:$0xff] %v2452_v22  ;;  %v1293_v21 = vmul.f32 %v1224_v15, %v1224_v15  ;;  %vm1132_vm9 = vcmp.lt.s32.totalorder %v1100_v17, 512  ;;  %v1072_v17 = vadd.s32 120, %v2367_v52 }
 0x10d   : > { %vm1139_vm15 = vcmp.lt.s32.totalorder %v1107_v59, 512 }
 0x10e   : > { %1032 = vst [vmem:[%s2379_s28 + $0x40] sm:$0xff] %v2455_v23  ;;  %v780_v24 = vpop.f32.mrf.mxu2 }
 0x10f   : > { %v869_v25 = vpop.f32.mrf.mxu3 }
 0x110   : > { %v742_v26 = vpop.f32.mrf.mxu0  ;;  %v870_v28 = vadd.f32 %v869_v25, %v780_v24  ;;  %v1069_v24 = vadd.s32 96, %v2367_v52 }
 0x111   : > { %v831_v27 = vpop.f32.mrf.mxu1 }
 0x112   : > { %v832_v29 = vadd.f32 %v831_v27, %v742_v26  ;;  %v2462_v30 = vadd.f32 %v2365_v49, %v870_v28  ;;  %v1226_v27 = vsel %vm1130_vm7, %v2445_v14, 0.0  ;;  %v1101_v28 = vadd.s32 %v2371_v54, %v1067_v16 }
 0x114   : > { %v2465_v31 = vadd.f32 %v2365_v49, %v832_v29  ;;  %1048 = vst [vmem:[%s2379_s28 + $0xc0] sm:$0xff] %v2462_v30  ;;  %vm1133_vm10 = vcmp.lt.s32.totalorder %v1101_v28, 512  ;;  %v1076_v28 = vadd.s32 152, %v2367_v52 }
 0x116   : > { %1033 = vst [vmem:[%s2379_s28 + $0x48] sm:$0xff] %v2465_v31  ;;  %v782_v33 = vpop.f32.mrf.mxu2  ;;  %v1228_v53 = vsel %vm1132_vm9, %v2465_v31, 0.0  ;;  %v1105_v31 = vadd.s32 %v2371_v54, %v1071_v47 }
 0x117   : > { %v871_v34 = vpop.f32.mrf.mxu3 }
 0x118   : > { %v745_v35 = vpop.f32.mrf.mxu0  ;;  %v872_v37 = vadd.f32 %v871_v34, %v782_v33  ;;  %vm1137_vm14 = vcmp.lt.s32.totalorder %v1105_v31, 512 }
 0x119   : > { %v834_v36 = vpop.f32.mrf.mxu1 }
 0x11a   : > { %v835_v38 = vadd.f32 %v834_v36, %v745_v35  ;;  %v2472_v39 = vadd.f32 %v2365_v49, %v872_v37  ;;  %v1294_v35 = vmul.f32 %v1225_v19, %v1225_v19  ;;  %v1227_v37 = vsel %vm1131_vm8, %v2455_v23, 0.0 }
 0x11c   : > { %v2475_v40 = vadd.f32 %v2365_v49, %v835_v38  ;;  %1049 = vst [vmem:[%s2379_s28 + $0xc8] sm:$0xff] %v2472_v39  ;;  %v1102_v38 = vadd.s32 %v2371_v54, %v1068_v20 }
 0x11e   : > { %1034 = vst [vmem:[%s2379_s28 + $0x50] sm:$0xff] %v2475_v40  ;;  %v785_v41 = vpop.f32.mrf.mxu2  ;;  %vm1134_vm11 = vcmp.lt.s32.totalorder %v1102_v38, 512 }
 0x11f   : > { %v874_v42 = vpop.f32.mrf.mxu3 }
 0x120   : > { %v747_v43 = vpop.f32.mrf.mxu0  ;;  %v875_v46 = vadd.f32 %v874_v42, %v785_v41  ;;  %v1070_v41 = vadd.s32 104, %v2367_v52  ;;  %v1324_v42 = vadd.f32 %v2419_v55, %v1293_v21  ;;  %v1108_v21 = vadd.s32 %v2371_v54, %v1074_v57 }
 0x121   : > { %v836_v44 = vpop.f32.mrf.mxu1 }
 0x122   : > { %v837_v50 = vadd.f32 %v836_v44, %v747_v43  ;;  %v2483_v51 = vadd.f32 %v2365_v49, %v875_v46  ;;  %v1295_v43 = vmul.f32 %v1226_v27, %v1226_v27  ;;  %v1103_v44 = vadd.s32 %v2371_v54, %v1069_v24 }
 0x123   : > { %v1256_v46 = vadd.f32 %v1255_v6, %v1225_v19  ;;  %v1325_v23 = vadd.f32 %v1324_v42, %v1294_v35  ;;  %v1104_v58 = vadd.s32 %v2371_v54, %v1070_v41  ;;  %v1075_v24 = vadd.s32 144, %v2367_v52 }
 0x124   : > { %v2487_v56 = vadd.f32 %v2365_v49, %v837_v50  ;;  %1050 = vst [vmem:[%s2379_s28 + $0xd0] sm:$0xff] %v2483_v51  ;;  %v1296_v50 = vmul.f32 %v1227_v37, %v1227_v37  ;;  %vm1135_vm12 = vcmp.lt.s32.totalorder %v1103_v44, 512  ;;  %vm1140_vm0 = vcmp.lt.s32.totalorder %v1108_v21, 512 }
 0x125   : > { %v1257_v55 = vadd.f32 %v1256_v46, %v1226_v27  ;;  %v1326_v62 = vadd.f32 %v1325_v23, %v1295_v43  ;;  %vm1136_vm13 = vcmp.lt.s32.totalorder %v1104_v58, 512  ;;  %v1110_v23 = vadd.s32 %v2371_v54, %v1076_v28 }
 0x126   : > { %1035 = vst [vmem:[%s2379_s28 + $0x58] sm:$0xff] %v2487_v56  ;;  %v787_v63 = vpop.f32.mrf.mxu2  ;;  %v1230_v15 = vsel %vm1134_vm11, %v2487_v56, 0.0  ;;  %v1082_v28 = vadd.s32 200, %v2367_v52 }
 0x127   : > { %v876_v0 = vpop.f32.mrf.mxu3  ;;  %v1327_v11 = vadd.f32 %v1326_v62, %v1296_v50  ;;  %v1299_v27 = vmul.f32 %v1230_v15, %v1230_v15  ;;  %v1078_v50 = vadd.s32 168, %v2367_v52  ;;  %vm1142_vm3 = vcmp.lt.s32.totalorder %v1110_v23, 512 }
 0x128   : > { %v750_v1 = vpop.f32.mrf.mxu0  ;;  %v877_v4 = vadd.f32 %v876_v0, %v787_v63  ;;  %v1229_v63 = vsel %vm1133_vm10, %v2475_v40, 0.0 }
 0x129   : > { %v839_v3 = vpop.f32.mrf.mxu1  ;;  %v1298_v40 = vmul.f32 %v1229_v63, %v1229_v63  ;;  %v1112_v31 = vadd.s32 %v2371_v54, %v1078_v50 }
 0x12a   : > { %v840_v9 = vadd.f32 %v839_v3, %v750_v1  ;;  %v2500_v10 = vadd.f32 %v2365_v49, %v877_v4  ;;  %v1258_v3 = vadd.f32 %v1257_v55, %v1227_v37  ;;  %v1297_v4 = vmul.f32 %v1228_v53, %v1228_v53 }
 0x12b   : > { %vm1144_vm5 = vcmp.lt.s32.totalorder %v1112_v31, 512  ;;  %v1087_v31 = vadd.s32 240, %v2367_v52 }
 0x12c   : > { %v2504_v12 = vadd.f32 %v2365_v49, %v840_v9  ;;  %1051 = vst [vmem:[%s2379_s28 + $0xd8] sm:$0xff] %v2500_v10  ;;  %v1259_v19 = vadd.f32 %v1258_v3, %v1228_v53  ;;  %v1328_v56 = vadd.f32 %v1327_v11, %v1297_v4  ;;  %v1235_v3 = vsel %vm1139_vm15, %v2385_v2, 0.0 }
 0x12d   : > { %v1304_v2 = vmul.f32 %v1235_v3, %v1235_v3 }
 0x12e   : > { %1036 = vst [vmem:[%s2379_s28 + $0x60] sm:$0xff] %v2504_v12  ;;  %v790_v25 = vpop.f32.mrf.mxu2  ;;  %v1260_v61 = vadd.f32 %v1259_v19, %v1229_v63 }
 0x12f   : > { %v879_v26 = vpop.f32.mrf.mxu3 }
 0x130   : > { %v752_v29 = vpop.f32.mrf.mxu0  ;;  %v880_v34 = vadd.f32 %v879_v26, %v790_v25  ;;  %v1231_v25 = vsel %vm1135_vm12, %v2504_v12, 0.0  ;;  %v1261_v6 = vadd.f32 %v1260_v61, %v1230_v15  ;;  %v1109_v12 = vadd.s32 %v2371_v54, %v1075_v24 }
 0x131   : > { %v841_v33 = vpop.f32.mrf.mxu1  ;;  %v1300_v35 = vmul.f32 %v1231_v25, %v1231_v25  ;;  %v1238_v61 = vsel %vm1142_vm3, %v2411_v45, 0.0 }
 0x132   : > { %v842_v36 = vadd.f32 %v841_v33, %v752_v29  ;;  %v2524_v14 = vadd.f32 %v2365_v49, %v880_v34  ;;  %v1106_v33 = vadd.s32 %v2371_v54, %v1072_v17  ;;  %v1329_v34 = vadd.f32 %v1328_v56, %v1298_v40 }
 0x133   : > { %v1262_v43 = vadd.f32 %v1261_v6, %v1231_v25  ;;  %vm1141_vm2 = vcmp.lt.s32.totalorder %v1109_v12, 512  ;;  %v1083_v12 = vadd.s32 208, %v2367_v52 }
 0x134   : > { %v1005_v48 = vadd.f32 %v2365_v49, %v842_v36  ;;  %1052 = vst [vmem:[%s2379_s28 + $0xe0] sm:$0xff] %v2524_v14  ;;  %v1077_v36 = vadd.s32 160, %v2367_v52  ;;  %v1330_v42 = vadd.f32 %v1329_v34, %v1299_v27  ;;  %vm1138_vm1 = vcmp.lt.s32.totalorder %v1106_v33, 512 }
 0x135   : > { %v1237_v17 = vsel %vm1141_vm2, %v2403_v32, 0.0 }
 0x136   : > { %1037 = vst [vmem:[%s2379_s28 + $0x68] sm:$0xff] %v1005_v48  ;;  %v792_v0 = vpop.f32.mrf.mxu2  ;;  %v1232_v29 = vsel %vm1136_vm13, %v1005_v48, 0.0  ;;  %v1331_v57 = vadd.f32 %v1330_v42, %v1300_v35  ;;  %v1111_v63 = vadd.s32 %v2371_v54, %v1077_v36  ;;  %v1306_v34 = vmul.f32 %v1237_v17, %v1237_v17 }
 0x137   : > { %v881_v1 = vpop.f32.mrf.mxu3  ;;  %v1301_v44 = vmul.f32 %v1232_v29, %v1232_v29  ;;  %v1263_v55 = vadd.f32 %v1262_v43, %v1232_v29 }
 0x138   : > { %v755_v7 = vpop.f32.mrf.mxu0  ;;  %v882_v9 = vadd.f32 %v881_v1, %v792_v0  ;;  %v1079_v0 = vadd.s32 176, %v2367_v52  ;;  %vm1143_vm4 = vcmp.lt.s32.totalorder %v1111_v63, 512 }
 0x139   : > { %v844_v8 = vpop.f32.mrf.mxu1  ;;  %v1332_v4 = vadd.f32 %v1331_v57, %v1301_v44  ;;  %v1239_v6 = vsel %vm1143_vm4, %v2422_v60, 0.0  ;;  %v1084_v44 = vadd.s32 216, %v2367_v52  ;;  %v1085_v57 = vadd.s32 224, %v2367_v52 }
 0x13a   : > { %v845_v16 = vadd.f32 %v844_v8, %v755_v7  ;;  %v2543_v20 = vadd.f32 %v2365_v49, %v882_v9  ;;  %v1236_v8 = vsel %vm1140_vm0, %v2394_v18, 0.0  ;;  %v1080_v9 = vadd.s32 184, %v2367_v52 }
 0x13b   : > { %v1113_v19 = vadd.s32 %v2371_v54, %v1079_v0  ;;  %v1081_v18 = vadd.s32 192, %v2367_v52  ;;  %v1305_v56 = vmul.f32 %v1236_v8, %v1236_v8  ;;  %v1308_v43 = vmul.f32 %v1239_v6, %v1239_v6 }
 0x13c   : > { %v1006_v26 = vadd.f32 %v2365_v49, %v845_v16  ;;  %1053 = vst [vmem:[%s2379_s28 + $0xe8] sm:$0xff] %v2543_v20  ;;  %v1114_v27 = vadd.s32 %v2371_v54, %v1080_v9 }
 0x13d   : > { %vm1145_vm6 = vcmp.lt.s32.totalorder %v1113_v19, 512  ;;  %v1115_v35 = vadd.s32 %v2371_v54, %v1081_v18  ;;  %v1121_v19 = vadd.s32 %v2371_v54, %v1087_v31 }
 0x13e   : > { %1038 = vst [vmem:[%s2379_s28 + $0x70] sm:$0xff] %v1006_v26  ;;  %v1233_v37 = vsel %vm1137_vm14, %v1006_v26, 0.0  ;;  %v795_v38 = vpop.f32.mrf.mxu2  ;;  %vm1146_vm7 = vcmp.lt.s32.totalorder %v1114_v27, 512  ;;  %v1241_v60 = vsel %vm1145_vm6, %v2442_v13, 0.0  ;;  %v1118_v13 = vadd.s32 %v2371_v54, %v1084_v44 }
 0x13f   : > { %v884_v41 = vpop.f32.mrf.mxu3  ;;  %v1302_v58 = vmul.f32 %v1233_v37, %v1233_v37  ;;  %v1264_v7 = vadd.f32 %v1263_v55, %v1233_v37  ;;  %v1307_v37 = vmul.f32 %v1238_v61, %v1238_v61  ;;  %vm1147_vm8 = vcmp.lt.s32.totalorder %v1115_v35, 512 }
 0x140   : > { %v757_v46 = vpop.f32.mrf.mxu0  ;;  %v885_v47 = vadd.f32 %v884_v41, %v795_v38  ;;  %v1240_v38 = vsel %vm1144_vm5, %v2432_v5, 0.0  ;;  %v1242_v50 = vsel %vm1146_vm7, %v2452_v22, 0.0  ;;  %v1310_v55 = vmul.f32 %v1241_v60, %v1241_v60 }
 0x141   : > { %v846_v48 = vpop.f32.mrf.mxu1  ;;  %v1333_v15 = vadd.f32 %v1332_v4, %v1302_v58  ;;  %v1309_v23 = vmul.f32 %v1240_v38, %v1240_v38  ;;  %v1243_v58 = vsel %vm1147_vm8, %v2462_v30, 0.0  ;;  %v1119_v22 = vadd.s32 %v2371_v54, %v1085_v57 }
 0x142   : > { %v847_v53 = vadd.f32 %v846_v48, %v757_v46  ;;  %v2560_v62 = vadd.f32 %v2365_v49, %v885_v47  ;;  %v1117_v46 = vadd.s32 %v2371_v54, %v1083_v12  ;;  %v1312_v9 = vmul.f32 %v1243_v58, %v1243_v58 }
 0x143   : > { %vm1150_vm11 = vcmp.lt.s32.totalorder %v1118_v13, 512  ;;  %vm1151_vm12 = vcmp.lt.s32.totalorder %v1119_v22, 512  ;;  %vm1153_vm14 = vcmp.lt.s32.totalorder %v1121_v19, 512 }
 0x144   : > { %v1007_v1 = vadd.f32 %v2365_v49, %v847_v53  ;;  %1054 = vst [vmem:[%s2379_s28 + $0xf0] sm:$0xff] %v2560_v62  ;;  %vm1149_vm10 = vcmp.lt.s32.totalorder %v1117_v46, 512 }
 0x146   : > { %1039 = vst [vmem:[%s2379_s28 + $0x78] sm:$0xff] %v1007_v1  ;;  %v1234_v11 = vsel %vm1138_vm1, %v1007_v1, 0.0  ;;  %v797_v40 = vpop.f32.mrf.mxu2  ;;  %v1086_v1 = vadd.s32 232, %v2367_v52 }
 0x147   : > { %v1265_v16 = vadd.f32 %v1264_v7, %v1234_v11  ;;  %v1303_v59 = vmul.f32 %v1234_v11, %v1234_v11  ;;  %v886_v21 = vpop.f32.mrf.mxu3  ;;  %v1245_v11 = vsel %vm1149_vm10, %v2483_v51, 0.0 }
 0x148   : > { %v887_v26 = vadd.f32 %v886_v21, %v797_v40  ;;  %v1314_v40 = vmul.f32 %v1245_v11, %v1245_v11  ;;  %v1246_v21 = vsel %vm1150_vm11, %v2500_v10, 0.0 }
 0x149   : > { %v1266_v24 = vadd.f32 %v1265_v16, %v1235_v3  ;;  %v1334_v25 = vadd.f32 %v1333_v15, %v1303_v59  ;;  %v1311_v3 = vmul.f32 %v1242_v50, %v1242_v50  ;;  %v1120_v16 = vadd.s32 %v2371_v54, %v1086_v1 }
 0x14a   : > { %v2582_v33 = vadd.f32 %v2365_v49, %v887_v26  ;;  %v1116_v49 = vadd.s32 %v2371_v54, %v1082_v28  ;;  %v1088_v59 = vadd.s32 248, %v2367_v52  ;;  %v1315_v26 = vmul.f32 %v1246_v21, %v1246_v21 }
 0x14b   : > { %v1267_v32 = vadd.f32 %v1266_v24, %v1236_v8  ;;  %v1335_v29 = vadd.f32 %v1334_v25, %v1304_v2  ;;  %vm1152_vm13 = vcmp.lt.s32.totalorder %v1120_v16, 512  ;;  %v1247_v25 = vsel %vm1151_vm12, %v2524_v14, 0.0 }
 0x14c   : > { %1055 = vst [vmem:[%s2379_s28 + $0xf8] sm:$0xff] %v2582_v33  ;;  %vm1148_vm9 = vcmp.lt.s32.totalorder %v1116_v49, 512  ;;  %v1122_v51 = vadd.s32 %v2371_v54, %v1088_v59  ;;  %v1248_v52 = vsel %vm1152_vm13, %v2543_v20, 0.0  ;;  %v1316_v28 = vmul.f32 %v1247_v25, %v1247_v25 }
 0x14d   : > { %v1268_v45 = vadd.f32 %v1267_v32, %v1237_v17  ;;  %v1336_v36 = vadd.f32 %v1335_v29, %v1305_v56  ;;  %v1244_v4 = vsel %vm1148_vm9, %v2472_v39, 0.0  ;;  %v1249_v29 = vsel %vm1153_vm14, %v2560_v62, 0.0 }
 0x14e   : > { %v1313_v2 = vmul.f32 %v1244_v4, %v1244_v4  ;;  %vm1154_vm15 = vcmp.lt.s32.totalorder %v1122_v51, 512  ;;  %v1318_v14 = vmul.f32 %v1249_v29, %v1249_v29 }
 0x14f   : > { %v1269_v41 = vadd.f32 %v1268_v45, %v1238_v61  ;;  %v1337_v42 = vadd.f32 %v1336_v36, %v1306_v34  ;;  %v1250_v35 = vsel %vm1154_vm15, %v2582_v33, 0.0 }
 0x151   : > { %v1270_v48 = vadd.f32 %v1269_v41, %v1239_v6  ;;  %v1338_v47 = vadd.f32 %v1337_v42, %v1307_v37  ;;  %v1317_v6 = vmul.f32 %v1248_v52, %v1248_v52  ;;  %v1319_v37 = vmul.f32 %v1250_v35, %v1250_v35 }
 0x153   : > { %v1271_v5 = vadd.f32 %v1270_v48, %v1240_v38  ;;  %v1339_v53 = vadd.f32 %v1338_v47, %v1308_v43 }
 0x155   : > { %v1340_v63 = vadd.f32 %v1339_v53, %v1309_v23  ;;  %v1272_v0 = vadd.f32 %v1271_v5, %v1241_v60 }
 0x157   : > { %v1273_v7 = vadd.f32 %v1272_v0, %v1242_v50  ;;  %v1341_v8 = vadd.f32 %v1340_v63, %v1310_v55 }
 0x159   : > { %v1274_v30 = vadd.f32 %v1273_v7, %v1243_v58  ;;  %v1342_v15 = vadd.f32 %v1341_v8, %v1311_v3 }
 0x15b   : > { %v1275_v17 = vadd.f32 %v1274_v30, %v1244_v4  ;;  %v1343_v39 = vadd.f32 %v1342_v15, %v1312_v9 }
 0x15d   : > { %v1276_v18 = vadd.f32 %v1275_v17, %v1245_v11  ;;  %v1344_v24 = vadd.f32 %v1343_v39, %v1313_v2 }
 0x15f   : > { %v1277_v56 = vadd.f32 %v1276_v18, %v1246_v21  ;;  %v1345_v61 = vadd.f32 %v1344_v24, %v1314_v40 }
 0x161   : > { %v1278_v27 = vadd.f32 %v1277_v56, %v1247_v25  ;;  %v1346_v32 = vadd.f32 %v1345_v61, %v1315_v26 }
 0x163   : > { %v1347_v10 = vadd.f32 %v1346_v32, %v1316_v28  ;;  %v1279_v34 = vadd.f32 %v1278_v27, %v1248_v52 }
 0x165   : > { %v1348_v54 = vadd.f32 %v1347_v10, %v1317_v6  ;;  %v1280_v12 = vadd.f32 %v1279_v34, %v1249_v29 }
 0x167   : > { %v1349_v45 = vadd.f32 %v1348_v54, %v1318_v14  ;;  %v1281_v36 = vadd.f32 %v1280_v12, %v1250_v35 }
 0x169   : > { %v1282_v38 = vrot.slane %v1281_v36, 4  ;;  %v1350_v49 = vadd.f32 %v1349_v45, %v1319_v37 }
 0x16b   : > { %v1283_v20 = vadd.f32 %v1282_v38, %v1281_v36  ;;  %v1351_v41 = vrot.slane %v1350_v49, 4 }
 0x16d   : > { %v1284_v42 = vrot.slane %v1283_v20, 2  ;;  %v1352_v43 = vadd.f32 %v1351_v41, %v1350_v49 }
 0x16f   : > { %v1285_v60 = vadd.f32 %v1284_v42, %v1283_v20  ;;  %v1353_v44 = vrot.slane %v1352_v43, 2 }
 0x171   : > { %v1286_v62 = vrot.slane %v1285_v60, 1  ;;  %v1354_v46 = vadd.f32 %v1353_v44, %v1352_v43  ;;  %1360 = sbr.rel (%p1763_p1) target bundleno = 376 (0x178), region = 52 }
 0x173   : > { %v1287_v48 = vadd.f32 %v1286_v62, %v1285_v60  ;;  %v1355_v47 = vrot.slane %v1354_v46, 1 }
 0x175   : > { %v1356_v23 = vadd.f32 %v1355_v47, %v1354_v46 }
 0x176   : > { %1361 = vst [vmem:[#allocation9] sm:$0x1] %v1287_v48 }
 0x177   : > { %1362 = vst [vmem:[#allocation11] sm:$0x1] %v1356_v23 }
 0x178 PF: > { %p1764_p4 = scmp.le.s32.totalorder %s2133_s21, 0 }
 0x17a   : > { %1366 = sbr.rel (%p1764_p4) target bundleno = 388 (0x184), region = 56 }
 0x17f   : > { %v1367_v33 = vld [vmem:[#allocation9] sm:$0x1]  ;;  %v1370_v50 = vld [vmem:[#allocation11] sm:$0x1] }
 0x180   : > { %v1368_v5 = vadd.f32 %v1367_v33, %v1287_v48  ;;  %v1371_v53 = vadd.f32 %v1370_v50, %v1356_v23 }
 0x182   : > { %1369 = vst [vmem:[#allocation9] sm:$0x1] %v1368_v5 }
 0x183   : > { %1372 = vst [vmem:[#allocation11] sm:$0x1] %v1371_v53 }
 0x184 PF: > { %s2148_s29 = smov [#allocation9]   ;;  %s1405_s24 = sshll.u32 %s2673_s4, 4  ;;  %s1406_s24 = int_to_ptr.hbm [resolvable:$true] %s1405_s24 }
 0x185   : > { %s1403_s8 = sshll.u32 %s2148_s29, 4  ;;  %s1386_s10 = scalar_lea.hbm %s2672_s3, %s1762_s1  ;;  %s1404_s8 = int_to_ptr.vmem [resolvable:$true] %s1403_s8 }
 0x186   : > { %1849 = dma.vmem_to_hbm [thread:$0]  (%p2220_p2), %s1404_s8, 16, %s1406_s24, [#allocation10]  }
 0x187   : > { %s1387_s11 = sshll.u32 %s2379_s28, 4  ;;  %s1389_s12 = sshll.u32 %s1386_s10, 4  ;;  %s1388_s11 = int_to_ptr.vmem [resolvable:$true] %s1387_s11  ;;  %s1390_s12 = int_to_ptr.hbm [resolvable:$true] %s1389_s12 }
 0x188   : > { %s1374_s17 = scalar_lea.sflag [#allocation5], %s2281_s14  ;;  %s2037_s25 = sshra.s32 %s1390_s12, 4  ;;  %s2038_s25 = int_to_ptr.hbm [resolvable:$true] %s2037_s25 }
 0x189   : > { %s2039_s6 = scalar_lea.hbm %s2038_s25, 256  ;;  %s2043_s21 = scalar_lea.hbm %s2672_s3, 512 }
 0x18a   : > { %p2040_p8 = scmp.ne.s32.totalorder %s2038_s25, %s2039_s6  ;;  %p2044_p0 = scmp.lt.s32.totalorder %s2038_s25, %s2672_s3 }
 0x18b   : > { %p2045_p3 = scmp.lt.s32.totalorder %s2043_s21, %s2039_s6 }
 0x18c   : > { %p2041_p12 = pnand %p2040_p8, %p2261_p5 }
 0x18d   : > { %p2046_p7 = por %p2045_p3, %p2044_p0 }
 0x18e   : > { %p2042_p13 = pneg %p2041_p12 }
 0x190   : > { %p2047_p9 = pnand %p2046_p7, %p2042_p13 }
 0x192   : > { %2050 = shalt.err (!%p2047_p9)
}
 0x193   : > { %s2149_s14 = smov 128   ;;  %s2150_s1 = smov 8  }
 0x194   : > { %1847 = dma.vmem_to_hbm [thread:$0]  (%p2261_p5), %s1388_s11, 4096, %s1390_s12, %s1374_s17, %s2149_s14, %s2149_s14, %s2150_s1  }
 0x195   : > { %s1418_s15 = sshll.u32 %s2674_s5, 4  ;;  %s2151_s24 = smov [#allocation11]   ;;  %s1419_s15 = int_to_ptr.hbm [resolvable:$true] %s1418_s15 }
 0x196   : > { %s1416_s7 = sshll.u32 %s2151_s24, 4  ;;  %s1417_s7 = int_to_ptr.vmem [resolvable:$true] %s1416_s7 }
 0x197   : > { %1851 = dma.vmem_to_hbm [thread:$0]  (%p2220_p2), %s1417_s7, 16, %s1419_s15, [#allocation10]  }
 0x198   : > { %2112 = dma.done.wait (%p2220_p2), [#allocation10], 32  }
 0x199   : > { %2114 = vsyncadd (%p2220_p2), [#allocation10], 4294967264 }
 0x19a PF: > { %s2692_s16 = sld [smem:[#allocation16_spill]]  ;;  %s1440_s10 = sand.u32 1, %s2121_s18  }
 0x19b   : > { %p1866_p5 = pnand %p1561_p11, %p2231_p6  ;;  %s1441_s11 = scalar_lea.sflag [#allocation5], %s1440_s10 }
 0x19d   : > { %p1867_p10 = pneg %p1866_p5 }
 0x19f   : > { %2116 = dma.done.wait (%p1867_p10), %s1441_s11, 4096  }
 0x1a0   : > { %2118 = vsyncadd (%p1867_p10), %s1441_s11, 4294963200  ;;  %s24_s23 = sadd.s32 1, %s2692_s16   ;;  %s2693_s27 = sld [smem:[#allocation18_spill]] }
 0x1a1   : > { %p21_p1 = scmp.ge.s32.totalorder %s24_s23, 4   ;;  %s2694_s18 = smov %s2125_s19 }
 0x1a2   : > { %s2695_s19 = smov %s2129_s20  ;;  %s2696_s20 = smov %s2270_s30 }
 0x1a3   : > { %s2697_s21 = smov %s2137_s22  ;;  %23 = sbr.rel (!%p21_p1) target bundleno = 10 (0xa), region = 119 }
 0x1a6   : > { %s2698_s22 = smov %s2693_s27 }
 0x1a8   :  { %1447 = vsyncpa [#allocation4], 1 }
 0x1a9   :  { %1449 = vsyncpa [#allocation4 + $0x1], 1 }
 0x1aa   :  { %1450 = vsyncpa [#allocation7], 1 }
 0x1ab   :  { %1451 = vsyncpa [#allocation5], 1 }
 0x1ac   :  { %1453 = vsyncpa [#allocation5 + $0x1], 1 }
 0x1ad   :  { %1454 = vsyncpa [#allocation10], 1 }

</bundles_post_ra>
